<compile_context>
chip_gen: v7x
topology: tpu7x:2x2x1
jax: 0.10.0
libtpu: 0.0.40
codegen_flags: <defaults>
</compile_context>

<pallas_src>
import functools

import numpy as np
import jax
import jax.numpy as jnp
from jax.experimental import pallas as pl
from jax.experimental.pallas import tpu as pltpu

LARGE_NUMBER = 1.0e9


def _ntxent_kernel(q_ref, kt_ref, loss_ref, acc_ref,
                   mx_sc, l_sc, sp_sc, mp_sc, mn_sc,
                   *, n, m, tau, aligned):
    """One grid step: (tm) query rows x (tn) key columns, online-softmax reduction."""
    i = pl.program_id(0)          # query-row tile
    k = pl.program_id(1)          # key-column tile (reduction axis, innermost)
    nk = pl.num_programs(1)
    tm = q_ref.shape[0]
    tn = kt_ref.shape[1]
    step = n // m

    @pl.when(k == 0)
    def _init():
        mx_sc[...] = jnp.full((tm, 1), -1e30, jnp.float32)
        l_sc[...] = jnp.zeros((tm, 1), jnp.float32)
        sp_sc[...] = jnp.zeros((tm, 1), jnp.float32)
        mp_sc[...] = jnp.full((tm, 1), LARGE_NUMBER, jnp.float32)
        mn_sc[...] = jnp.full((tm, 1), -LARGE_NUMBER, jnp.float32)

    # (tm, tn) logits tile on the MXU: unit-norm bf16 operands, f32 accumulation,
    # temperature applied as a single f32 multiply.
    s = jnp.dot(q_ref[...], kt_ref[...], preferred_element_type=jnp.float32)
    if tau != 1.0:
        s = s * np.float32(1.0 / tau)

    rloc = jax.lax.broadcasted_iota(jnp.int32, (tm, tn), 0)
    cloc = jax.lax.broadcasted_iota(jnp.int32, (tm, tn), 1)

    if aligned:
        # tn == tm and tm | step: the self block is key tile k == i, and positive
        # band j is key tile (i + j*step/tm) mod nk; inside those tiles the mask is
        # the local identity, so all mask work is O(tm^2).
        eye = rloc == cloc
        s = jnp.where(jnp.logical_and(eye, k == i), -LARGE_NUMBER, s)

        step_t = step // tm
        is_pos = None
        for j in range(1, m):
            pt = i + j * step_t
            pt = jnp.where(pt >= nk, pt - nk, pt)   # j*step_t < nk -> one wrap max
            hit = (k == pt)
            is_pos = hit if is_pos is None else jnp.logical_or(is_pos, hit)
    else:
        # General fallback (single full-width key tile): global-index masks.
        row = i * tm + rloc
        col = k * tn + cloc
        s = jnp.where(col == row, -LARGE_NUMBER, s)
        pos = None
        for j in range(1, m):
            tgt = row + j * step
            tgt = jnp.where(tgt >= n, tgt - n, tgt)
            hit = (col == tgt)
            pos = hit if pos is None else jnp.logical_or(pos, hit)

    # Online softmax over key tiles (self entries sit at -1e9, so exp underflows to
    # zero exactly like the reference's masked log_softmax denominator).
    t_max = jnp.max(s, axis=1, keepdims=True)
    m_new = jnp.maximum(mx_sc[...], t_max)
    alpha = jnp.exp(mx_sc[...] - m_new)
    l_sc[...] = alpha * l_sc[...] + jnp.sum(jnp.exp(s - m_new), axis=1, keepdims=True)
    mx_sc[...] = m_new

    if aligned:
        @pl.when(is_pos)
        def _pos_tile():
            # Exactly one positive per row in this tile, on the local diagonal.
            pos_val = jnp.sum(jnp.where(eye, s, 0.0), axis=1, keepdims=True)
            sp_sc[...] = sp_sc[...] + pos_val
            mp_sc[...] = jnp.minimum(mp_sc[...], pos_val)
            mn_sc[...] = jnp.maximum(
                mn_sc[...],
                jnp.max(jnp.where(eye, -LARGE_NUMBER, s), axis=1, keepdims=True))

        @pl.when(jnp.logical_not(is_pos))
        def _neg_tile():
            # No positives here (diag already masked): tile max is a negative max.
            mn_sc[...] = jnp.maximum(mn_sc[...], t_max)
    else:
        sp_sc[...] = sp_sc[...] + jnp.sum(jnp.where(pos, s, 0.0), axis=1, keepdims=True)
        mp_sc[...] = jnp.minimum(
            mp_sc[...],
            jnp.min(jnp.where(pos, s, LARGE_NUMBER), axis=1, keepdims=True))
        mn_sc[...] = jnp.maximum(
            mn_sc[...],
            jnp.max(jnp.where(pos, -LARGE_NUMBER, s), axis=1, keepdims=True))

    @pl.when(k == nk - 1)
    def _finalize():
        # -sum_pos logprob = (m-1) * logsumexp(row) - sum_pos logits
        lse = mx_sc[...] + jnp.log(l_sc[...])
        loss_ref[...] = (m - 1) * lse - sp_sc[...]                       # (tm, 1)
        # top-(m-1) set accuracy: every positive strictly above every negative.
        acc_ref[...] = (mp_sc[...] > mn_sc[...]).astype(jnp.float32)     # (tm, 1)


def _choose_tiles(n, m):
    """Returns (tm, tn, aligned).  Aligned path needs tm == tn, tm | n//m."""
    step = n // m
    cands = (512, 256, 128) if n >= 4096 else (256, 128)
    for cand in cands:
        if step % cand == 0:
            return cand, cand, True
    # Fallback for small / awkward n: single full-width key tile.
    tm = n
    for cand in range(min(n, 256), 7, -1):
        if n % cand == 0 and cand % 8 == 0:
            tm = cand
            break
    return tm, n, False


def _vmem_limit_bytes(tm, tn, d_pad):
    """Device-aware scoped-VMEM budget (never exceeds physical capacity)."""
    try:
        cap = int(pltpu.get_tpu_info().vmem_capacity_bytes)
    except Exception:
        cap = 64 * 1024 * 1024            # v7x-safe default
    blocks = 2 * (tm * d_pad * 2) + 2 * (d_pad * tn * 2) + 4 * (tm * 4)  # dbl-buffered
    slabs = 8 * tm * tn * 4                                              # f32/int temps
    need = blocks + slabs + (4 << 20)
    return int(min(max(need, 16 << 20), cap - (8 << 20)))


def ntxent(z, z_clip=None, *, tau=1.0, multiplier=2, norm=1.0):
    """Forward pass of the reference NTXent module.  Returns (loss, acc)."""
    del z_clip  # the reference forward never uses it
    n, d = z.shape
    m = int(multiplier)
    assert m >= 2 and n % m == 0

    # Hoisted, one-shot normalization (wrapper-side XLA): unit-norm rows in bf16;
    # the temperature is applied inside the kernel on the f32 logits.
    zf = z.astype(jnp.float32)
    zn = zf / jnp.maximum(jnp.sqrt(jnp.sum(zf * zf, axis=1, keepdims=True)), 1e-12)
    d_pad = max(128, ((d + 127) // 128) * 128)
    if d_pad != d:   # zero feature columns change neither norms nor dot products
        zn = jnp.pad(zn, ((0, 0), (0, d_pad - d)))
    zn_q = zn.astype(jnp.bfloat16)       # (n, d_pad) queries
    zn_kt = zn_q.T                       # (d_pad, n) pre-transposed keys (done once)

    tm, tn, aligned = _choose_tiles(n, m)
    ni, nk = n // tm, n // tn

    kern = functools.partial(_ntxent_kernel, n=n, m=m, tau=float(tau), aligned=aligned)
    loss_rows, acc = pl.pallas_call(
        kern,
        grid=(ni, nk),
        in_specs=[
            pl.BlockSpec((tm, d_pad), lambda i, k: (i, 0)),
            pl.BlockSpec((d_pad, tn), lambda i, k: (0, k)),
        ],
        out_specs=(
            pl.BlockSpec((tm, 1), lambda i, k: (i, 0)),
            pl.BlockSpec((tm, 1), lambda i, k: (i, 0)),
        ),
        out_shape=(
            jax.ShapeDtypeStruct((n, 1), jnp.float32),
            jax.ShapeDtypeStruct((n, 1), jnp.float32),
        ),
        scratch_shapes=[pltpu.VMEM((tm, 1), jnp.float32) for _ in range(5)],
        compiler_params=pltpu.CompilerParams(
            dimension_semantics=("parallel", "arbitrary"),
            vmem_limit_bytes=_vmem_limit_bytes(tm, tn, d_pad),
        ),
    )(zn_q, zn_kt)

    loss = jnp.sum(loss_rows) / n / (m - 1) / norm
    return loss, acc[:, 0]


def _ntxent_reference(z, *, tau=1.0, multiplier=2, norm=1.0):
    """Pure-JAX transcription of the PyTorch forward (loss, acc), for checking."""
    n = z.shape[0]
    m = multiplier
    zf = jnp.asarray(z, jnp.float32)
    zn = zf / jnp.maximum(jnp.sqrt(jnp.sum(zf * zf, axis=1, keepdims=True)), 1e-12)
    zn = zn / np.sqrt(tau)
    logits = zn @ zn.T
    diag = np.eye(n, dtype=bool)
    logits = jnp.where(diag, -LARGE_NUMBER, logits)
    labels = (np.repeat(np.arange(n), m) + np.tile(np.arange(m) * n // m, n)) % n
    labels = labels.reshape(n, m)[:, 1:]                     # (n, m-1) positive cols
    rows = np.repeat(np.arange(n), m - 1)
    logprob = jax.nn.log_softmax(logits, axis=1)
    loss = -logprob[rows, labels.reshape(-1)].sum() / n / (m - 1) / norm
    pred = jnp.where(diag, -LARGE_NUMBER, logprob)
    pos_mask = np.zeros((n, n), dtype=bool)
    pos_mask[rows, labels.reshape(-1)] = True
    min_pos = jnp.min(jnp.where(pos_mask, pred, LARGE_NUMBER), axis=1)
    max_neg = jnp.max(jnp.where(pos_mask, -LARGE_NUMBER, pred), axis=1)
    acc = (min_pos > max_neg).astype(jnp.float32)
    return loss, acc


def _make_multicrop_batch(key, n, d, m, noise=0.05):
    """n rows where row i and its positives (i + j*n/m) % n are noisy copies."""
    keys = jax.random.split(key, m + 1)
    base = jax.random.normal(keys[0], (n // m, d), dtype=jnp.float32)
    views = [base + noise * jax.random.normal(keys[j + 1], (n // m, d), jnp.float32)
             for j in range(m)]
    return jnp.concatenate(views, axis=0)


if __name__ == "__main__":
    key = jax.random.PRNGKey(0)
    k1, k2, k3, k4 = jax.random.split(key, 4)

    # Case 1: small shape (fallback single-key-tile path).  z_clip is accepted for
    # API parity but unused by the reference forward.
    n, d = 16, 32
    z = _make_multicrop_batch(k1, n, d, 2)
    z_clip = jax.random.normal(k2, (n, d), dtype=jnp.float32)
    loss, acc = jax.jit(ntxent)(z, z_clip)
    jax.block_until_ready((loss, acc))
    ref_loss, ref_acc = _ntxent_reference(z)
    assert loss.shape == () and acc.shape == (n,)
    assert abs(float(loss) - float(ref_loss)) < 5e-2, (float(loss), float(ref_loss))
    assert bool(jnp.all(acc == ref_acc))

    # Case 2: aligned 2-D tiled path (tm = tn = 256, grid 2x2), tau != 1.
    n, d = 512, 96
    z = _make_multicrop_batch(k3, n, d, 2)
    loss, acc = jax.jit(functools.partial(ntxent, tau=0.5))(z)
    jax.block_until_ready((loss, acc))
    ref_loss, ref_acc = _ntxent_reference(z, tau=0.5)
    assert abs(float(loss) - float(ref_loss)) < 5e-2, (float(loss), float(ref_loss))
    assert bool(jnp.all(acc == ref_acc))

    # Case 3: multiplier = 4 (multiple positive tiles per row tile).
    n, d = 512, 64
    z = _make_multicrop_batch(k4, n, d, 4)
    loss, acc = jax.jit(functools.partial(ntxent, multiplier=4))(z)
    jax.block_until_ready((loss, acc))
    ref_loss, ref_acc = _ntxent_reference(z, multiplier=4)
    assert abs(float(loss) - float(ref_loss)) < 5e-2, (float(loss), float(ref_loss))
    assert bool(jnp.all(acc == ref_acc))

    print("KERNEL_OK")
</pallas_src>

<mosaic_0001>
module attributes {stable_mosaic.version = 11 : i64} {
  func.func @_ntxent_kernel(%arg0: i32, %arg1: i32, %arg2: memref<16x128xbf16, #tpu.memory_space<vmem>>, %arg3: memref<128x16xbf16, #tpu.memory_space<vmem>>, %arg4: memref<16x1xf32, #tpu.memory_space<vmem>>, %arg5: memref<16x1xf32, #tpu.memory_space<vmem>>, %arg6: memref<16x1xf32, #tpu.memory_space<vmem>>, %arg7: memref<16x1xf32, #tpu.memory_space<vmem>>, %arg8: memref<16x1xf32, #tpu.memory_space<vmem>>, %arg9: memref<16x1xf32, #tpu.memory_space<vmem>>, %arg10: memref<16x1xf32, #tpu.memory_space<vmem>>) attributes {dimension_semantics = [#tpu.dimension_semantics<parallel>, #tpu.dimension_semantics<arbitrary>], iteration_bounds = array<i64: 1, 1>, scalar_prefetch = 0 : i64, scratch_operands = 5 : i64, tpu.core_type = #tpu.core_type<tc>, window_params = [{transform_indices = @transform_0, window_bounds = array<i64: 16, 128>}, {transform_indices = @transform_1, window_bounds = array<i64: 128, 16>}, {transform_indices = @transform_2, window_bounds = array<i64: 16, 1>}, {transform_indices = @transform_3, window_bounds = array<i64: 16, 1>}]} {
    %c0_i32 = arith.constant 0 : i32
    %0 = arith.cmpi eq, %arg1, %c0_i32 : i32
    %1 = arith.extui %0 : i1 to i32
    %c0_i32_0 = arith.constant 0 : i32
    %2 = arith.cmpi ne, %1, %c0_i32_0 : i32
    scf.if %2 {
      %cst_40 = arith.constant -1.000000e+30 : f32
      %66 = vector.broadcast %cst_40 : f32 to vector<16x1xf32>
      %c0_41 = arith.constant 0 : index
      %c0_42 = arith.constant 0 : index
      %67 = vector.load %arg6[%c0_41, %c0_42] : memref<16x1xf32, #tpu.memory_space<vmem>>, vector<16x1xf32>
      tpu.vector_store %arg6[%c0_41, %c0_42], %66 {strides = array<i32>} : memref<16x1xf32, #tpu.memory_space<vmem>>, vector<16x1xf32>,
      %cst_43 = arith.constant 0.000000e+00 : f32
      %68 = vector.broadcast %cst_43 : f32 to vector<16x1xf32>
      %c0_44 = arith.constant 0 : index
      %c0_45 = arith.constant 0 : index
      %69 = vector.load %arg7[%c0_44, %c0_45] : memref<16x1xf32, #tpu.memory_space<vmem>>, vector<16x1xf32>
      tpu.vector_store %arg7[%c0_44, %c0_45], %68 {strides = array<i32>} : memref<16x1xf32, #tpu.memory_space<vmem>>, vector<16x1xf32>,
      %cst_46 = arith.constant 0.000000e+00 : f32
      %70 = vector.broadcast %cst_46 : f32 to vector<16x1xf32>
      %c0_47 = arith.constant 0 : index
      %c0_48 = arith.constant 0 : index
      %71 = vector.load %arg8[%c0_47, %c0_48] : memref<16x1xf32, #tpu.memory_space<vmem>>, vector<16x1xf32>
      tpu.vector_store %arg8[%c0_47, %c0_48], %70 {strides = array<i32>} : memref<16x1xf32, #tpu.memory_space<vmem>>, vector<16x1xf32>,
      %cst_49 = arith.constant 1.000000e+09 : f32
      %72 = vector.broadcast %cst_49 : f32 to vector<16x1xf32>
      %c0_50 = arith.constant 0 : index
      %c0_51 = arith.constant 0 : index
      %73 = vector.load %arg9[%c0_50, %c0_51] : memref<16x1xf32, #tpu.memory_space<vmem>>, vector<16x1xf32>
      tpu.vector_store %arg9[%c0_50, %c0_51], %72 {strides = array<i32>} : memref<16x1xf32, #tpu.memory_space<vmem>>, vector<16x1xf32>,
      %cst_52 = arith.constant -1.000000e+09 : f32
      %74 = vector.broadcast %cst_52 : f32 to vector<16x1xf32>
      %c0_53 = arith.constant 0 : index
      %c0_54 = arith.constant 0 : index
      %75 = vector.load %arg10[%c0_53, %c0_54] : memref<16x1xf32, #tpu.memory_space<vmem>>, vector<16x1xf32>
      tpu.vector_store %arg10[%c0_53, %c0_54], %74 {strides = array<i32>} : memref<16x1xf32, #tpu.memory_space<vmem>>, vector<16x1xf32>,
    } else {
    }
    %c0 = arith.constant 0 : index
    %c0_1 = arith.constant 0 : index
    %3 = vector.load %arg2[%c0, %c0_1] : memref<16x128xbf16, #tpu.memory_space<vmem>>, vector<16x128xbf16>
    %c0_2 = arith.constant 0 : index
    %c0_3 = arith.constant 0 : index
    %4 = vector.load %arg3[%c0_2, %c0_3] : memref<128x16xbf16, #tpu.memory_space<vmem>>, vector<128x16xbf16>
    %cst = arith.constant dense<0.000000e+00> : vector<16x16xf32>
    %5 = tpu.matmul %3, %4, %cst {dimension_numbers = #tpu.dot_dimension_numbers<[1], [0], [0], [1], [0, 0, 1, 1], [], []>} : vector<16x128xbf16>, vector<128x16xbf16>, vector<16x16xf32> -> vector<16x16xf32>
    %6 = tpu.iota {dimensions = array<i32: 0>} : vector<16x16xi32>
    %7 = tpu.iota {dimensions = array<i32: 1>} : vector<16x16xi32>
    %c16_i32 = arith.constant 16 : i32
    %8 = arith.muli %arg0, %c16_i32 : i32
    %9 = vector.broadcast %8 : i32 to vector<16x16xi32>
    %10 = arith.addi %9, %6 : vector<16x16xi32>
    %c16_i32_4 = arith.constant 16 : i32
    %11 = arith.muli %arg1, %c16_i32_4 : i32
    %12 = vector.broadcast %11 : i32 to vector<16x16xi32>
    %13 = arith.addi %12, %7 : vector<16x16xi32>
    %14 = arith.cmpi eq, %13, %10 : vector<16x16xi32>
    %cst_5 = arith.constant -1.000000e+09 : f32
    %15 = vector.broadcast %cst_5 : f32 to vector<16x16xf32>
    %16 = arith.select %14, %15, %5 : vector<16x16xi1>, vector<16x16xf32>
    %c8_i32 = arith.constant 8 : i32
    %17 = vector.broadcast %c8_i32 : i32 to vector<16x16xi32>
    %18 = arith.addi %10, %17 : vector<16x16xi32>
    %c16_i32_6 = arith.constant 16 : i32
    %19 = vector.broadcast %c16_i32_6 : i32 to vector<16x16xi32>
    %20 = arith.cmpi sge, %18, %19 : vector<16x16xi32>
    %c16_i32_7 = arith.constant 16 : i32
    %21 = vector.broadcast %c16_i32_7 : i32 to vector<16x16xi32>
    %22 = arith.subi %18, %21 : vector<16x16xi32>
    %23 = arith.select %20, %22, %18 : vector<16x16xi1>, vector<16x16xi32>
    %24 = arith.cmpi eq, %13, %23 : vector<16x16xi32>
    %cst_8 = arith.constant dense<0xFF800000> : vector<16xf32>
    %25 = vector.multi_reduction <maximumf>, %16, %cst_8 [1] : vector<16x16xf32> to vector<16xf32>
    %26 = vector.shape_cast %25 : vector<16xf32> to vector<16x1xf32>
    %c0_9 = arith.constant 0 : index
    %c0_10 = arith.constant 0 : index
    %27 = vector.load %arg6[%c0_9, %c0_10] : memref<16x1xf32, #tpu.memory_space<vmem>>, vector<16x1xf32>
    %28 = arith.maximumf %27, %26 : vector<16x1xf32>
    %c0_11 = arith.constant 0 : index
    %c0_12 = arith.constant 0 : index
    %29 = vector.load %arg6[%c0_11, %c0_12] : memref<16x1xf32, #tpu.memory_space<vmem>>, vector<16x1xf32>
    %30 = arith.subf %29, %28 : vector<16x1xf32>
    %31 = math.exp %30 : vector<16x1xf32>
    %c0_13 = arith.constant 0 : index
    %c0_14 = arith.constant 0 : index
    %32 = vector.load %arg7[%c0_13, %c0_14] : memref<16x1xf32, #tpu.memory_space<vmem>>, vector<16x1xf32>
    %33 = arith.mulf %31, %32 : vector<16x1xf32>
    %34 = vector.broadcast %28 : vector<16x1xf32> to vector<16x16xf32>
    %35 = arith.subf %16, %34 : vector<16x16xf32>
    %36 = math.exp %35 : vector<16x16xf32>
    %cst_15 = arith.constant dense<0.000000e+00> : vector<16xf32>
    %37 = vector.multi_reduction <add>, %36, %cst_15 [1] : vector<16x16xf32> to vector<16xf32>
    %38 = vector.shape_cast %37 : vector<16xf32> to vector<16x1xf32>
    %39 = arith.addf %33, %38 : vector<16x1xf32>
    %c0_16 = arith.constant 0 : index
    %c0_17 = arith.constant 0 : index
    %40 = vector.load %arg7[%c0_16, %c0_17] : memref<16x1xf32, #tpu.memory_space<vmem>>, vector<16x1xf32>
    tpu.vector_store %arg7[%c0_16, %c0_17], %39 {strides = array<i32>} : memref<16x1xf32, #tpu.memory_space<vmem>>, vector<16x1xf32>,
    %c0_18 = arith.constant 0 : index
    %c0_19 = arith.constant 0 : index
    %41 = vector.load %arg6[%c0_18, %c0_19] : memref<16x1xf32, #tpu.memory_space<vmem>>, vector<16x1xf32>
    tpu.vector_store %arg6[%c0_18, %c0_19], %28 {strides = array<i32>} : memref<16x1xf32, #tpu.memory_space<vmem>>, vector<16x1xf32>,
    %c0_20 = arith.constant 0 : index
    %c0_21 = arith.constant 0 : index
    %42 = vector.load %arg8[%c0_20, %c0_21] : memref<16x1xf32, #tpu.memory_space<vmem>>, vector<16x1xf32>
    %cst_22 = arith.constant 0.000000e+00 : f32
    %43 = vector.broadcast %cst_22 : f32 to vector<16x16xf32>
    %44 = arith.select %24, %16, %43 : vector<16x16xi1>, vector<16x16xf32>
    %cst_23 = arith.constant dense<0.000000e+00> : vector<16xf32>
    %45 = vector.multi_reduction <add>, %44, %cst_23 [1] : vector<16x16xf32> to vector<16xf32>
    %46 = vector.shape_cast %45 : vector<16xf32> to vector<16x1xf32>
    %47 = arith.addf %42, %46 : vector<16x1xf32>
    %c0_24 = arith.constant 0 : index
    %c0_25 = arith.constant 0 : index
    %48 = vector.load %arg8[%c0_24, %c0_25] : memref<16x1xf32, #tpu.memory_space<vmem>>, vector<16x1xf32>
    tpu.vector_store %arg8[%c0_24, %c0_25], %47 {strides = array<i32>} : memref<16x1xf32, #tpu.memory_space<vmem>>, vector<16x1xf32>,
    %c0_26 = arith.constant 0 : index
    %c0_27 = arith.constant 0 : index
    %49 = vector.load %arg9[%c0_26, %c0_27] : memref<16x1xf32, #tpu.memory_space<vmem>>, vector<16x1xf32>
    %cst_28 = arith.constant 1.000000e+09 : f32
    %50 = vector.broadcast %cst_28 : f32 to vector<16x16xf32>
    %51 = arith.select %24, %16, %50 : vector<16x16xi1>, vector<16x16xf32>
    %cst_29 = arith.constant dense<0x7F800000> : vector<16xf32>
    %52 = vector.multi_reduction <minimumf>, %51, %cst_29 [1] : vector<16x16xf32> to vector<16xf32>
    %53 = vector.shape_cast %52 : vector<16xf32> to vector<16x1xf32>
    %54 = arith.minimumf %49, %53 : vector<16x1xf32>
    %c0_30 = arith.constant 0 : index
    %c0_31 = arith.constant 0 : index
    %55 = vector.load %arg9[%c0_30, %c0_31] : memref<16x1xf32, #tpu.memory_space<vmem>>, vector<16x1xf32>
    tpu.vector_store %arg9[%c0_30, %c0_31], %54 {strides = array<i32>} : memref<16x1xf32, #tpu.memory_space<vmem>>, vector<16x1xf32>,
    %c0_32 = arith.constant 0 : index
    %c0_33 = arith.constant 0 : index
    %56 = vector.load %arg10[%c0_32, %c0_33] : memref<16x1xf32, #tpu.memory_space<vmem>>, vector<16x1xf32>
    %cst_34 = arith.constant -1.000000e+09 : f32
    %57 = vector.broadcast %cst_34 : f32 to vector<16x16xf32>
    %58 = arith.select %24, %57, %16 : vector<16x16xi1>, vector<16x16xf32>
    %cst_35 = arith.constant dense<0xFF800000> : vector<16xf32>
    %59 = vector.multi_reduction <maximumf>, %58, %cst_35 [1] : vector<16x16xf32> to vector<16xf32>
    %60 = vector.shape_cast %59 : vector<16xf32> to vector<16x1xf32>
    %61 = arith.maximumf %56, %60 : vector<16x1xf32>
    %c0_36 = arith.constant 0 : index
    %c0_37 = arith.constant 0 : index
    %62 = vector.load %arg10[%c0_36, %c0_37] : memref<16x1xf32, #tpu.memory_space<vmem>>, vector<16x1xf32>
    tpu.vector_store %arg10[%c0_36, %c0_37], %61 {strides = array<i32>} : memref<16x1xf32, #tpu.memory_space<vmem>>, vector<16x1xf32>,
    %c0_i32_38 = arith.constant 0 : i32
    %63 = arith.cmpi eq, %arg1, %c0_i32_38 : i32
    %64 = arith.extui %63 : i1 to i32
    %c0_i32_39 = arith.constant 0 : i32
    %65 = arith.cmpi ne, %64, %c0_i32_39 : i32
    scf.if %65 {
      %c0_40 = arith.constant 0 : index
      %c0_41 = arith.constant 0 : index
      %66 = vector.load %arg6[%c0_40, %c0_41] : memref<16x1xf32, #tpu.memory_space<vmem>>, vector<16x1xf32>
      %c0_42 = arith.constant 0 : index
      %c0_43 = arith.constant 0 : index
      %67 = vector.load %arg7[%c0_42, %c0_43] : memref<16x1xf32, #tpu.memory_space<vmem>>, vector<16x1xf32>
      %68 = math.log %67 : vector<16x1xf32>
      %69 = arith.addf %66, %68 : vector<16x1xf32>
      %cst_44 = arith.constant 1.000000e+00 : f32
      %70 = vector.broadcast %cst_44 : f32 to vector<16x1xf32>
      %71 = arith.mulf %70, %69 : vector<16x1xf32>
      %c0_45 = arith.constant 0 : index
      %c0_46 = arith.constant 0 : index
      %72 = vector.load %arg8[%c0_45, %c0_46] : memref<16x1xf32, #tpu.memory_space<vmem>>, vector<16x1xf32>
      %73 = arith.subf %71, %72 : vector<16x1xf32>
      %c0_47 = arith.constant 0 : index
      %c0_48 = arith.constant 0 : index
      %74 = vector.load %arg4[%c0_47, %c0_48] : memref<16x1xf32, #tpu.memory_space<vmem>>, vector<16x1xf32>
      tpu.vector_store %arg4[%c0_47, %c0_48], %73 {strides = array<i32>} : memref<16x1xf32, #tpu.memory_space<vmem>>, vector<16x1xf32>,
      %c0_49 = arith.constant 0 : index
      %c0_50 = arith.constant 0 : index
      %75 = vector.load %arg9[%c0_49, %c0_50] : memref<16x1xf32, #tpu.memory_space<vmem>>, vector<16x1xf32>
      %c0_51 = arith.constant 0 : index
      %c0_52 = arith.constant 0 : index
      %76 = vector.load %arg10[%c0_51, %c0_52] : memref<16x1xf32, #tpu.memory_space<vmem>>, vector<16x1xf32>
      %77 = arith.cmpf ogt, %75, %76 : vector<16x1xf32>
      %78 = arith.extui %77 : vector<16x1xi1> to vector<16x1xi32>
      %79 = arith.sitofp %78 : vector<16x1xi32> to vector<16x1xf32>
      %c0_53 = arith.constant 0 : index
      %c0_54 = arith.constant 0 : index
      %80 = vector.load %arg5[%c0_53, %c0_54] : memref<16x1xf32, #tpu.memory_space<vmem>>, vector<16x1xf32>
      tpu.vector_store %arg5[%c0_53, %c0_54], %79 {strides = array<i32>} : memref<16x1xf32, #tpu.memory_space<vmem>>, vector<16x1xf32>,
    } else {
    }
    return
  }
  func.func @transform_0(%arg0: i32, %arg1: i32) -> (i32, i32) {
    %c0_i32 = arith.constant 0 : i32
    %c0_i32_0 = arith.constant 0 : i32
    return %arg0, %c0_i32 : i32, i32
  }
  func.func @transform_1(%arg0: i32, %arg1: i32) -> (i32, i32) {
    %c0_i32 = arith.constant 0 : i32
    %c0_i32_0 = arith.constant 0 : i32
    return %c0_i32, %arg1 : i32, i32
  }
  func.func @transform_2(%arg0: i32, %arg1: i32) -> (i32, i32) {
    %c0_i32 = arith.constant 0 : i32
    %c0_i32_0 = arith.constant 0 : i32
    return %arg0, %c0_i32 : i32, i32
  }
  func.func @transform_3(%arg0: i32, %arg1: i32) -> (i32, i32) {
    %c0_i32 = arith.constant 0 : i32
    %c0_i32_0 = arith.constant 0 : i32
    return %arg0, %c0_i32 : i32, i32
  }
}

</mosaic_0001>

<bundles_post_ra>
// kernel: ntxent.1
= control target key start
LH: loop header
LB: loop body
LE: loop exit
PB: predicated region body
PF: predicated region fallthrough
CT: control target
= control target key end

     0   :  { %v370_v0 = vmov 0.0   ;;  %vm371_vm0 = vmmov 0   ;;  %v142_v10 = vlaneseq  ;;  %vm18_vm2 = vcmask 7168   ;;  %s517_s1 = inlined_call_operand.vmem [shape: bf16[128,16], index: 1, kind: input, shape index: {}]   ;;  %s518_s0 = inlined_call_operand.vmem [shape: bf16[16,128], index: 0, kind: input, shape index: {}]   ;;  %s519_s2 = inlined_call_operand.vmem [shape: f32[16,1], index: 2, kind: output, shape index: {0}]   ;;  %s520_s3 = inlined_call_operand.vmem [shape: f32[16,1], index: 3, kind: output, shape index: {1}]  }
   0x1   :  { %321 = vmatprep.subr.bf16.mxu0 %v370_v0  ;;  %v349_v1 = vld [vmem:[%s517_s1] sm:$0xff]   ;;  %337 = vmatprep.mubr.msk.bf16.mxu0 %vm371_vm0, %v370_v0  ;;  %v350_v2 = vld [vmem:[%s517_s1 + $0x8] sm:$0xff]   ;;  %v351_v3 = vld [vmem:[%s517_s1 + $0x10] sm:$0xff]   ;;  %v372_v16 = vmov -1e+30   ;;  %21 = vst.msk [vmem:[#allocation3] sm:$0xff] %vm18_vm2, %v370_v0 }
   0x2   :  { %322 = vmatpush3.bf16.msra.mxu0 %v349_v1  ;;  %v352_v4 = vld [vmem:[%s517_s1 + $0x18] sm:$0xff]   ;;  %v353_v5 = vld [vmem:[%s517_s1 + $0x20] sm:$0xff]   ;;  %v354_v6 = vld [vmem:[%s517_s1 + $0x28] sm:$0xff]   ;;  %v143_v11 = vshrl.u32 %v142_v10, 7  ;;  %v435_v14 = vand.u32 127, %v142_v10  ;;  %19 = vst.msk [vmem:[#allocation2] sm:$0xff] %vm18_vm2, %v372_v16 }
   0x3   :  { %323 = vmatprep.subr.bf16.mxu0 %v370_v0  ;;  %v355_v7 = vld [vmem:[%s517_s1 + $0x30] sm:$0xff]   ;;  %v356_v8 = vld [vmem:[%s517_s1 + $0x38] sm:$0xff]   ;;  %v357_v9 = vld [vmem:[%s518_s0] sm:$0xff]   ;;  %20 = vst.msk [vmem:[#allocation2 + $0x8] sm:$0xff] %vm18_vm2, %v372_v16  ;;  %vm168_vm4 = vcmask 130048   ;;  %v373_v25 = vmov 0  }
   0x4   :  { %v432_v12 = vadd.s32 8, %v143_v11  ;;  %22 = vst.msk [vmem:[#allocation3 + $0x8] sm:$0xff] %vm18_vm2, %v370_v0  ;;  %23 = vst.msk [vmem:[#allocation4] sm:$0xff] %vm18_vm2, %v370_v0  ;;  %vm154_vm3 = vcmp.eq.s32.totalorder %v435_v14, %v143_v11  ;;  %347 = vset.pattern.permute.xlu1 %v373_v25  ;;  %348 = vset.pattern.permute.xlu0 %v373_v25  ;;  %v374_v55 = vmov 1e+09  }
   0x5   :  { %24 = vst.msk [vmem:[#allocation4 + $0x8] sm:$0xff] %vm18_vm2, %v370_v0  ;;  %25 = vst.msk [vmem:[#allocation5] sm:$0xff] %vm18_vm2, %v374_v55  ;;  %v375_v57 = vmov -1e+09  }
   0x6   :  { %324 = vmatpush3.bf16.msra.mxu0 %v350_v2  ;;  %v159_v13 = vadd.s32 8, %v432_v12  ;;  %vm155_vm5 = vcmp.eq.s32.totalorder %v435_v14, %v432_v12  ;;  %26 = vst.msk [vmem:[#allocation5 + $0x8] sm:$0xff] %vm18_vm2, %v374_v55  ;;  %27 = vst.msk [vmem:[#allocation6] sm:$0xff] %vm18_vm2, %v375_v57 }
   0x7   :  { %325 = vmatprep.subr.bf16.mxu0 %v370_v0  ;;  %28 = vst.msk [vmem:[#allocation6 + $0x8] sm:$0xff] %vm18_vm2, %v375_v57 }
   0x8   :  { %v437_v15 = vadd.s32 4294967280, %v159_v13  ;;  %v185_v61 = vld [vmem:[#allocation3] sm:$0xff] }
   0x9   :  { %v175_v26 = vld [vmem:[#allocation2] sm:$0xff] }
   0xa   :  { %326 = vmatpush3.bf16.msra.mxu0 %v351_v3  ;;  %vm167_vm1 = vcmp.eq.s32.totalorder %v435_v14, %v437_v15  ;;  %v176_v29 = vld [vmem:[#allocation2 + $0x8] sm:$0xff] }
   0xb   :  { %327 = vmatprep.subr.bf16.mxu0 %v370_v0  ;;  %v186_v2 = vld [vmem:[#allocation3 + $0x8] sm:$0xff] }
   0xc   :  { %v219_v10 = vld [vmem:[#allocation4 + $0x8] sm:$0xff]  ;;  %v232_v14 = vld [vmem:[#allocation5] sm:$0xff] }
   0xe   :  { %328 = vmatpush3.bf16.msra.mxu0 %v352_v4  ;;  %v218_v4 = vld [vmem:[#allocation4] sm:$0xff] }
   0xf   :  { %329 = vmatprep.subr.bf16.mxu0 %v370_v0 }
  0x12   :  { %330 = vmatpush3.bf16.msra.mxu0 %v353_v5 }
  0x13   :  { %331 = vmatprep.subr.bf16.mxu0 %v370_v0 }
  0x16   :  { %332 = vmatpush3.bf16.msra.mxu0 %v354_v6 }
  0x17   :  { %333 = vmatprep.subr.bf16.mxu0 %v370_v0 }
  0x1a   :  { %334 = vmatpush3.bf16.msra.mxu0 %v355_v7 }
  0x1b   :  { %335 = vmatprep.subr.bf16.mxu0 %v370_v0 }
  0x1e   :  { %336 = vmatpush3.bf16.msra.mxu0 %v356_v8 }
  0x21   :  { %338 = vmatmul.mubr.bf16.vlgmr.msra.gmra.mrb[0].mxu0 %v357_v9 }
  0xf4   :  { %v135_v17 = vpop.f32.mrb[0].mxu0 }
  0xf5   :  { %v156_v18 = vsel %vm154_vm3, -1e+09, %v135_v17  ;;  %v339_v19 = vpop.f32.mrb[1].mxu0 }
  0xf6   :  { %v138_v20 = vpop.f32.mrb[2].mxu0  ;;  %v169_v21 = vsel %vm168_vm4, %v156_v18, -inf  ;;  %v220_v42 = vsel %vm155_vm5, %v156_v18, 0.0  ;;  %v234_v48 = vsel %vm155_vm5, %v156_v18, 1e+09 }
  0xf7   :  { %v157_v22 = vsel %vm155_vm5, -1e+09, %v138_v20  ;;  %170 = vmax.xlane.f32.xlu0 %v169_v21  ;;  %v340_v23 = vpop.f32.mrb[3].mxu0  ;;  %v222_v44 = vsel %vm168_vm4, %v220_v42, 0.0  ;;  %v236_v49 = vsel %vm168_vm4, %v234_v48, inf  ;;  %v246_v21 = vld [vmem:[#allocation6] sm:$0xff] }
  0xf8   :  { %v172_v24 = vsel %vm168_vm4, %v157_v22, -inf  ;;  %v221_v46 = vsel %vm167_vm1, %v157_v22, 0.0  ;;  %v235_v50 = vsel %vm167_vm1, %v157_v22, 1e+09  ;;  %v248_v52 = vsel %vm155_vm5, -1e+09, %v156_v18 }
  0xf9   :  { %v225_v47 = vsel %vm168_vm4, %v221_v46, 0.0  ;;  %v239_v51 = vsel %vm168_vm4, %v235_v50, inf  ;;  %v250_v53 = vsel %vm168_vm4, %v248_v52, -inf  ;;  %v249_v54 = vsel %vm167_vm1, -1e+09, %v157_v22 }
  0xfa   :  { %v253_v56 = vsel %vm168_vm4, %v249_v54, -inf }
  0xfb   :  { %173 = vmax.xlane.f32.xlu0 %v172_v24 }
 0x184   :  { %v171_v27 = vpop.xlane.xlu0 %170 }
 0x185   :  { %v177_v28 = vmax.f32 %v175_v26, %v171_v27 }
 0x187   :  { %v179_v30 = vsub.f32 %v175_v26, %v177_v28  ;;  %216 = vst.msk [vmem:[#allocation2] sm:$0xff] %vm18_vm2, %v177_v28  ;;  %191 = vperm.xlu1 %347, %v177_v28   ;;  %v247_v26 = vld [vmem:[#allocation6 + $0x8] sm:$0xff] }
 0x188   :  { %v174_v31 = vpop.xlane.xlu0 %173 }
 0x189   :  { %v178_v32 = vmax.f32 %v176_v29, %v174_v31  ;;  %v181_v58 = vmul.f32 1.442695, %v179_v30 }
 0x18b   :  { %v180_v33 = vsub.f32 %v176_v29, %v178_v32  ;;  %217 = vst.msk [vmem:[#allocation2 + $0x8] sm:$0xff] %vm18_vm2, %v178_v32  ;;  %196 = vperm.xlu1 %347, %v178_v32  }
 0x18d   :  { %v183_v59 = vmul.f32 1.442695, %v180_v33 }
 0x18e   :  { %v263_v27 = vld [vmem:[#allocation2] sm:$0xff] }
 0x206   :  { %v192_v34 = vpop.permute.xlu1 %191 }
 0x207   :  { %v199_v35 = vsub.f32 %v156_v18, %v192_v34  ;;  %v233_v18 = vld [vmem:[#allocation5 + $0x8] sm:$0xff] }
 0x209   :  { %v201_v36 = vmul.f32 1.442695, %v199_v35  ;;  %v264_v35 = vld [vmem:[#allocation2 + $0x8] sm:$0xff] }
 0x20a   :  { %v197_v37 = vpop.permute.xlu1 %196 }
 0x20b   :  { %358 = vpow2.f32 %v201_v36  ;;  %v200_v38 = vsub.f32 %v157_v22, %v197_v37 }
 0x20d   :  { %v203_v39 = vmul.f32 1.442695, %v200_v38 }
 0x20f   :  { %360 = vpow2.f32 %v203_v39 }
 0x210   :  { %362 = vpow2.f32 %v181_v58 }
 0x211   :  { %364 = vpow2.f32 %v183_v59 }
 0x215   :  { %v359_v40 = vpop.eup %358 }
 0x216   :  { %v205_v41 = vsel %vm168_vm4, %v359_v40, 0.0 }
 0x217   :  { %206 = vadd.xlane.f32.xlu0 %v205_v41 }
 0x219   :  { %v361_v43 = vpop.eup %360 }
 0x21a   :  { %v208_v45 = vsel %vm168_vm4, %v361_v43, 0.0  ;;  %v363_v60 = vpop.eup %362 }
 0x21b   :  { %223 = vadd.xlane.f32.xlu0 %v222_v44  ;;  %209 = vadd.xlane.f32.xlu1 %v208_v45  ;;  %v187_v62 = vmul.f32 %v363_v60, %v185_v61  ;;  %v365_v63 = vpop.eup %364 }
 0x21c   :  { %v188_v5 = vmul.f32 %v365_v63, %v186_v2 }
 0x21f   :  { %226 = vadd.xlane.f32.xlu0 %v225_v47 }
 0x223   :  { %237 = vmin.xlane.f32.xlu0 %v236_v49 }
 0x227   :  { %240 = vmin.xlane.f32.xlu0 %v239_v51 }
 0x22b   :  { %251 = vmax.xlane.f32.xlu0 %v250_v53 }
 0x22f   :  { %254 = vmax.xlane.f32.xlu0 %v253_v56 }
 0x2a4   :  { %v207_v1 = vpop.xlane.xlu0 %206 }
 0x2a5   :  { %v211_v3 = vadd.f32 %v207_v1, %v187_v62 }
 0x2a7   :  { %214 = vst.msk [vmem:[#allocation3] sm:$0xff] %vm18_vm2, %v211_v3 }
 0x2a8   :  { %v210_v6 = vpop.xlane.xlu1 %209  ;;  %v224_v7 = vpop.xlane.xlu0 %223 }
 0x2a9   :  { %v212_v8 = vadd.f32 %v210_v6, %v188_v5  ;;  %v228_v9 = vadd.f32 %v224_v7, %v218_v4 }
 0x2ab   :  { %215 = vst.msk [vmem:[#allocation3 + $0x8] sm:$0xff] %vm18_vm2, %v212_v8  ;;  %230 = vst.msk [vmem:[#allocation4] sm:$0xff] %vm18_vm2, %v228_v9 }
 0x2ac   :  { %v227_v11 = vpop.xlane.xlu0 %226 }
 0x2ad   :  { %v229_v12 = vadd.f32 %v227_v11, %v219_v10 }
 0x2ae   :  { %v265_v13 = vld [vmem:[#allocation3] sm:$0xff] }
 0x2af   :  { %366 = vlog2.f32 %v265_v13  ;;  %231 = vst.msk [vmem:[#allocation4 + $0x8] sm:$0xff] %vm18_vm2, %v229_v12 }
 0x2b0   :  { %v238_v15 = vpop.xlane.xlu0 %237 }
 0x2b1   :  { %v242_v16 = vmin.f32 %v232_v14, %v238_v15 }
 0x2b2   :  { %v266_v17 = vld [vmem:[#allocation3 + $0x8] sm:$0xff]  ;;  %v273_v31 = vld [vmem:[#allocation4] sm:$0xff] }
 0x2b3   :  { %368 = vlog2.f32 %v266_v17  ;;  %244 = vst.msk [vmem:[#allocation5] sm:$0xff] %vm18_vm2, %v242_v16 }
 0x2b4   :  { %v241_v19 = vpop.xlane.xlu0 %240 }
 0x2b5   :  { %v243_v20 = vmin.f32 %v233_v18, %v241_v19 }
 0x2b6   :  { %v274_v37 = vld [vmem:[#allocation4 + $0x8] sm:$0xff] }
 0x2b7   :  { %245 = vst.msk [vmem:[#allocation5 + $0x8] sm:$0xff] %vm18_vm2, %v243_v20 }
 0x2b8   :  { %v252_v22 = vpop.xlane.xlu0 %251 }
 0x2b9   :  { %v367_v23 = vpop.eup %366  ;;  %v256_v24 = vmax.f32 %v246_v21, %v252_v22 }
 0x2ba   :  { %v268_v25 = vmul.f32 0.6931472, %v367_v23  ;;  %v279_v39 = vld [vmem:[#allocation5] sm:$0xff] }
 0x2bb   :  { %258 = vst.msk [vmem:[#allocation6] sm:$0xff] %vm18_vm2, %v256_v24 }
 0x2bc   :  { %v271_v28 = vadd.f32 %v268_v25, %v263_v27  ;;  %v255_v29 = vpop.xlane.xlu0 %254 }
 0x2bd   :  { %v369_v30 = vpop.eup %368  ;;  %v257_v32 = vmax.f32 %v247_v26, %v255_v29 }
 0x2be   :  { %v275_v33 = vsub.f32 %v271_v28, %v273_v31  ;;  %v270_v34 = vmul.f32 0.6931472, %v369_v30  ;;  %v280_v42 = vld [vmem:[#allocation5 + $0x8] sm:$0xff] }
 0x2bf   :  { %259 = vst.msk [vmem:[#allocation6 + $0x8] sm:$0xff] %vm18_vm2, %v257_v32 }
 0x2c0   :  { %277 = vst.msk [vmem:[%s519_s2] sm:$0xff] %vm18_vm2, %v275_v33  ;;  %v272_v36 = vadd.f32 %v270_v34, %v264_v35 }
 0x2c2   :  { %v276_v38 = vsub.f32 %v272_v36, %v274_v37  ;;  %v281_v40 = vld [vmem:[#allocation6] sm:$0xff] }
 0x2c3   :  { %vm283_vm6 = vcmp.gt.f32.partialorder %v279_v39, %v281_v40 }
 0x2c4   :  { %278 = vst.msk [vmem:[%s519_s2 + $0x8] sm:$0xff] %vm18_vm2, %v276_v38  ;;  %v310_v41 = vsel %vm283_vm6, 1.0, %v370_v0 }
 0x2c5   :  { %289 = vst.msk [vmem:[%s520_s3] sm:$0xff] %vm18_vm2, %v310_v41 }
 0x2c6   :  { %v282_v43 = vld [vmem:[#allocation6 + $0x8] sm:$0xff] }
 0x2c7   :  { %vm284_vm7 = vcmp.gt.f32.partialorder %v280_v42, %v282_v43 }
 0x2c8   :  { %v311_v44 = vsel %vm284_vm7, 1.0, %v370_v0 }
 0x2c9   :  { %290 = vst.msk [vmem:[%s520_s3 + $0x8] sm:$0xff] %vm18_vm2, %v311_v44 }

</bundles_post_ra>
